<compile_context>
chip_gen: v7x
topology: tpu7x:2x2x1
jax: 0.10.0
libtpu: 0.0.40
codegen_flags: <defaults>
</compile_context>

<pallas_src>
import jax
import jax.numpy as jnp
import numpy as np
from jax.experimental import pallas as pl
from jax.experimental.pallas import tpu as pltpu

_LANE = 128        # TPU lane width (last dim of a vreg tile)
_SUBLANE = 8       # TPU sublane width (second-to-last dim of a f32 vreg tile)
_NEG_SLOPE = 0.01  # PyTorch nn.LeakyReLU default negative_slope


def _round_up(x, m):
    return (x + m - 1) // m * m


# --------------------------------------------------------------------------
# Kernels
# --------------------------------------------------------------------------

def _fwd_kernel(xo_ref, xa_ref, w1o_ref, w1a_ref, b1_ref, w2_ref, b2_ref, out_ref):
    """Batched forward: leaky_relu(obs@W1o + act@W1a + b1) @ W2 + b2."""
    xo = xo_ref[...].astype(jnp.bfloat16)
    xa = xa_ref[...].astype(jnp.bfloat16)
    # fc1 (concat done via split weights -> two MXU matmuls, f32 accumulation)
    h = jnp.dot(xo, w1o_ref[...].astype(jnp.bfloat16),
                preferred_element_type=jnp.float32)
    h = h + jnp.dot(xa, w1a_ref[...].astype(jnp.bfloat16),
                    preferred_element_type=jnp.float32)
    h = h + b1_ref[...]
    # LeakyReLU in f32 (keeps the VPU path f32 for v5e)
    h = jnp.where(h > 0, h, jnp.float32(_NEG_SLOPE) * h)
    # fc2
    y = jnp.dot(h.astype(jnp.bfloat16), w2_ref[...].astype(jnp.bfloat16),
                preferred_element_type=jnp.float32)
    out_ref[...] = y + b2_ref[...]


def _rollout_kernel(obs0_ref, a_ref, w1o_ref, w1a_ref, b1_ref, w2_ref, b2_ref,
                    traj_ref, state_ref):
    """Closed-loop rollout: one grid step == one time step; state lives in VMEM.

    The state is kept broadcast across all 8 sublane rows so every matmul is a
    clean (8,128)x(128,128) MXU op (redundant rows cost nothing: the MXU pads
    to a full systolic pass anyway).
    """
    t = pl.program_id(0)

    @pl.when(t == 0)
    def _():
        state_ref[...] = obs0_ref[...]          # all rows = initial observation

    r = t % _SUBLANE                            # row within the 8-step action chunk
    s = state_ref[...]                          # (8, d_obs_p), rows identical
    a_row = a_ref[pl.ds(r, 1), :]               # (1, d_act_p) -> action at step t
    a_t = jnp.broadcast_to(a_row, (s.shape[0], a_row.shape[1]))

    h = jnp.dot(s.astype(jnp.bfloat16), w1o_ref[...].astype(jnp.bfloat16),
                preferred_element_type=jnp.float32)
    h = h + jnp.dot(a_t.astype(jnp.bfloat16), w1a_ref[...].astype(jnp.bfloat16),
                    preferred_element_type=jnp.float32)
    h = h + b1_ref[...]
    h = jnp.where(h > 0, h, jnp.float32(_NEG_SLOPE) * h)
    y = jnp.dot(h.astype(jnp.bfloat16), w2_ref[...].astype(jnp.bfloat16),
                preferred_element_type=jnp.float32)
    y = y + b2_ref[...]                         # (8, d_out_p), rows identical

    state_ref[...] = y                          # carry next state (padding lanes stay 0)
    traj_ref[pl.ds(r, 1), :] = y[0:1, :]        # lane-dense row write into (8,128) chunk


# --------------------------------------------------------------------------
# Parameters
# --------------------------------------------------------------------------

def init_params(key, dim_observation, dim_action, dim_hidden):
    """Logical (unpadded) params mimicking nn.Linear init U(-1/sqrt(fan_in), ...).

    Stored transposed relative to PyTorch: w1 is (d_in, hidden), w2 is (hidden, d_obs).
    """
    d_in = dim_observation + dim_action
    k1, k2, k3, k4 = jax.random.split(key, 4)
    bound1 = 1.0 / np.sqrt(d_in)
    bound2 = 1.0 / np.sqrt(dim_hidden)
    w1 = jax.random.uniform(k1, (d_in, dim_hidden), jnp.float32, -bound1, bound1)
    b1 = jax.random.uniform(k2, (dim_hidden,), jnp.float32, -bound1, bound1)
    w2 = jax.random.uniform(k3, (dim_hidden, dim_observation), jnp.float32, -bound2, bound2)
    b2 = jax.random.uniform(k4, (dim_observation,), jnp.float32, -bound2, bound2)
    return dict(w1=w1, b1=b1, w2=w2, b2=b2,
                dims=(dim_observation, dim_action, dim_hidden))


def pack_params(logical):
    """Zero-pad weights to lane-dense kernel layout; split fc1 into obs/action halves."""
    d_obs, d_act, d_hid = logical["dims"]
    w1 = jnp.asarray(logical["w1"], jnp.float32)
    b1 = jnp.asarray(logical["b1"], jnp.float32)
    w2 = jnp.asarray(logical["w2"], jnp.float32)
    b2 = jnp.asarray(logical["b2"], jnp.float32)

    d_obs_p = _round_up(d_obs, _LANE)
    d_act_p = _round_up(d_act, _LANE)
    d_hid_p = _round_up(d_hid, _LANE)

    w1o = jnp.zeros((d_obs_p, d_hid_p), jnp.float32).at[:d_obs, :d_hid].set(w1[:d_obs])
    w1a = jnp.zeros((d_act_p, d_hid_p), jnp.float32).at[:d_act, :d_hid].set(w1[d_obs:])
    b1p = jnp.zeros((1, d_hid_p), jnp.float32).at[0, :d_hid].set(b1)
    w2p = jnp.zeros((d_hid_p, d_obs_p), jnp.float32).at[:d_hid, :d_obs].set(w2)
    b2p = jnp.zeros((1, d_obs_p), jnp.float32).at[0, :d_obs].set(b2)
    return dict(w1o=w1o, w1a=w1a, b1=b1p, w2=w2p, b2=b2p,
                dims=(d_obs, d_act, d_hid))


# --------------------------------------------------------------------------
# Wrappers
# --------------------------------------------------------------------------

def model_rnn_forward(obs, act, packed, *, tm_max=512):
    """Batched forward. obs: (B, dim_obs), act: (B, dim_act) -> (B, dim_obs)."""
    d_obs, d_act, _ = packed["dims"]
    w1o, w1a, b1, w2, b2 = (packed["w1o"], packed["w1a"], packed["b1"],
                            packed["w2"], packed["b2"])
    d_obs_p, d_hid_p = w1o.shape
    d_act_p = w1a.shape[0]
    d_out_p = w2.shape[1]

    obs = jnp.asarray(obs, jnp.float32)
    act = jnp.asarray(act, jnp.float32)
    B = obs.shape[0]
    tm = min(tm_max, _round_up(B, _SUBLANE))
    B_pad = _round_up(B, tm)

    obs_p = jnp.zeros((B_pad, d_obs_p), jnp.float32).at[:B, :d_obs].set(obs)
    act_p = jnp.zeros((B_pad, d_act_p), jnp.float32).at[:B, :d_act].set(act)

    out = pl.pallas_call(
        _fwd_kernel,
        out_shape=jax.ShapeDtypeStruct((B_pad, d_out_p), jnp.float32),
        grid_spec=pltpu.PrefetchScalarGridSpec(
            num_scalar_prefetch=0,
            grid=(B_pad // tm,),
            in_specs=[
                pl.BlockSpec((tm, d_obs_p), lambda i: (i, 0)),
                pl.BlockSpec((tm, d_act_p), lambda i: (i, 0)),
                # weights/biases: constant index_map -> VMEM-resident, no re-DMA
                pl.BlockSpec((d_obs_p, d_hid_p), lambda i: (0, 0)),
                pl.BlockSpec((d_act_p, d_hid_p), lambda i: (0, 0)),
                pl.BlockSpec((1, d_hid_p), lambda i: (0, 0)),
                pl.BlockSpec((d_hid_p, d_out_p), lambda i: (0, 0)),
                pl.BlockSpec((1, d_out_p), lambda i: (0, 0)),
            ],
            out_specs=pl.BlockSpec((tm, d_out_p), lambda i: (i, 0)),
        ),
        compiler_params=pltpu.CompilerParams(
            dimension_semantics=("parallel",),
            vmem_limit_bytes=32 * 1024 * 1024,   # sized for v7x's 64 MiB physical VMEM
        ),
    )(obs_p, act_p, w1o, w1a, b1, w2, b2)
    return out[:B, :d_obs]


def model_out(observation, action, packed):
    """Mirror of ModelRNN.model_out for one (obs, action) pair.

    Prefer model_rnn_forward with a real batch: a single-row call is pure
    dispatch overhead.
    """
    y = model_rnn_forward(jnp.asarray(observation)[None, :],
                          jnp.asarray(action)[None, :], packed)
    return y[0]


def model_rnn_rollout(obs_init, actions, packed):
    """T-step closed-loop rollout in ONE pallas_call.

    obs_init: (dim_obs,), actions: (T, dim_act) -> trajectory (T, dim_obs)
    with traj[t] = f(traj[t-1], actions[t]) and traj[-1] := obs_init.
    """
    d_obs, d_act, _ = packed["dims"]
    w1o, w1a, b1, w2, b2 = (packed["w1o"], packed["w1a"], packed["b1"],
                            packed["w2"], packed["b2"])
    d_obs_p, d_hid_p = w1o.shape
    d_act_p = w1a.shape[0]
    d_out_p = w2.shape[1]

    actions = jnp.asarray(actions, jnp.float32)
    T = actions.shape[0]
    T_pad = _round_up(T, _SUBLANE)

    obs0 = jnp.asarray(obs_init, jnp.float32)
    obs0_p = jnp.zeros((_SUBLANE, d_obs_p), jnp.float32).at[:, :d_obs].set(
        jnp.broadcast_to(obs0[None, :], (_SUBLANE, d_obs)))
    act_p = jnp.zeros((T_pad, d_act_p), jnp.float32).at[:T, :d_act].set(actions)

    traj = pl.pallas_call(
        _rollout_kernel,
        out_shape=jax.ShapeDtypeStruct((T_pad, d_out_p), jnp.float32),
        grid_spec=pltpu.PrefetchScalarGridSpec(
            num_scalar_prefetch=0,
            grid=(T,),
            in_specs=[
                pl.BlockSpec((_SUBLANE, d_obs_p), lambda t: (0, 0)),
                # actions streamed in 8-step (8,128) chunks
                pl.BlockSpec((_SUBLANE, d_act_p), lambda t: (t // _SUBLANE, 0)),
                pl.BlockSpec((d_obs_p, d_hid_p), lambda t: (0, 0)),
                pl.BlockSpec((d_act_p, d_hid_p), lambda t: (0, 0)),
                pl.BlockSpec((1, d_hid_p), lambda t: (0, 0)),
                pl.BlockSpec((d_hid_p, d_out_p), lambda t: (0, 0)),
                pl.BlockSpec((1, d_out_p), lambda t: (0, 0)),
            ],
            # trajectory written back once per 8 steps as a dense (8,128) tile
            out_specs=pl.BlockSpec((_SUBLANE, d_out_p), lambda t: (t // _SUBLANE, 0)),
            scratch_shapes=[pltpu.VMEM((_SUBLANE, d_obs_p), jnp.float32)],
        ),
        compiler_params=pltpu.CompilerParams(
            dimension_semantics=("arbitrary",),   # sequential state carry
            vmem_limit_bytes=32 * 1024 * 1024,
        ),
    )(obs0_p, act_p, w1o, w1a, b1, w2, b2)
    return traj[:T, :d_obs]


# --------------------------------------------------------------------------
# Precision-matched JAX references
# --------------------------------------------------------------------------

def _ref_step(obs_row, act_row, logical):
    w1, b1, w2, b2 = logical["w1"], logical["b1"], logical["w2"], logical["b2"]
    d_obs = logical["dims"][0]
    bf, f32 = jnp.bfloat16, jnp.float32
    h = (jnp.dot(obs_row[None, :].astype(bf), w1[:d_obs].astype(bf),
                 preferred_element_type=f32)
         + jnp.dot(act_row[None, :].astype(bf), w1[d_obs:].astype(bf),
                   preferred_element_type=f32)
         + b1[None, :])
    h = jnp.where(h > 0, h, jnp.float32(_NEG_SLOPE) * h)
    y = jnp.dot(h.astype(bf), w2.astype(bf), preferred_element_type=f32) + b2[None, :]
    return y[0]


def _ref_forward(obs, act, logical):
    return jax.vmap(lambda o, a: _ref_step(o, a, logical))(obs, act)


def _ref_rollout(obs_init, actions, logical):
    def step(state, a):
        y = _ref_step(state, a, logical)
        return y, y
    _, traj = jax.lax.scan(step, jnp.asarray(obs_init, jnp.float32),
                           jnp.asarray(actions, jnp.float32))
    return traj


# --------------------------------------------------------------------------
# Demo / checks
# --------------------------------------------------------------------------

if __name__ == "__main__":
    dim_observation, dim_action, dim_hidden = 4, 4, 32
    batch, T = 8, 16

    key = jax.random.PRNGKey(0)
    pkey, okey, akey, o0key, askey = jax.random.split(key, 5)

    logical = init_params(pkey, dim_observation, dim_action, dim_hidden)
    packed = pack_params(logical)

    # 1) batched forward (model_out over a batch of (obs, action) pairs)
    obs_b = jax.random.normal(okey, (batch, dim_observation), jnp.float32)
    act_b = jax.random.normal(akey, (batch, dim_action), jnp.float32)
    y = jax.block_until_ready(model_rnn_forward(obs_b, act_b, packed))
    assert y.shape == (batch, dim_observation)
    y_ref = _ref_forward(obs_b, act_b, logical)
    np.testing.assert_allclose(np.asarray(y), np.asarray(y_ref), rtol=1e-3, atol=1e-3)

    # 2) single (obs, action) model_out path
    y1 = jax.block_until_ready(model_out(obs_b[0], act_b[0], packed))
    assert y1.shape == (dim_observation,)
    np.testing.assert_allclose(np.asarray(y1), np.asarray(y_ref[0]), rtol=1e-3, atol=1e-3)

    # 3) closed-loop rollout: entire T-step time loop inside one pallas_call
    obs0 = jax.random.normal(o0key, (dim_observation,), jnp.float32)
    acts = jax.random.normal(askey, (T, dim_action), jnp.float32)
    traj = jax.block_until_ready(model_rnn_rollout(obs0, acts, packed))
    assert traj.shape == (T, dim_observation)
    traj_ref = _ref_rollout(obs0, acts, logical)
    np.testing.assert_allclose(np.asarray(traj), np.asarray(traj_ref), rtol=1e-3, atol=1e-3)

    print("KERNEL_OK")
</pallas_src>

<mosaic_0001>
module attributes {stable_mosaic.version = 11 : i64} {
  func.func @_fwd_kernel(%arg0: i32, %arg1: memref<8x128xf32, #tpu.memory_space<vmem>>, %arg2: memref<8x128xf32, #tpu.memory_space<vmem>>, %arg3: memref<128x128xf32, #tpu.memory_space<vmem>>, %arg4: memref<128x128xf32, #tpu.memory_space<vmem>>, %arg5: memref<1x128xf32, #tpu.memory_space<vmem>>, %arg6: memref<128x128xf32, #tpu.memory_space<vmem>>, %arg7: memref<1x128xf32, #tpu.memory_space<vmem>>, %arg8: memref<8x128xf32, #tpu.memory_space<vmem>>) attributes {dimension_semantics = [#tpu.dimension_semantics<parallel>], iteration_bounds = array<i64: 1>, scalar_prefetch = 0 : i64, scratch_operands = 0 : i64, tpu.core_type = #tpu.core_type<tc>, window_params = [{transform_indices = @transform_0, window_bounds = array<i64: 8, 128>}, {transform_indices = @transform_1, window_bounds = array<i64: 8, 128>}, {pipeline_mode = #tpu.pipeline_mode<synchronous>, transform_indices = @transform_2, window_bounds = array<i64: 128, 128>}, {pipeline_mode = #tpu.pipeline_mode<synchronous>, transform_indices = @transform_3, window_bounds = array<i64: 128, 128>}, {pipeline_mode = #tpu.pipeline_mode<synchronous>, transform_indices = @transform_4, window_bounds = array<i64: 1, 128>}, {pipeline_mode = #tpu.pipeline_mode<synchronous>, transform_indices = @transform_5, window_bounds = array<i64: 128, 128>}, {pipeline_mode = #tpu.pipeline_mode<synchronous>, transform_indices = @transform_6, window_bounds = array<i64: 1, 128>}, {transform_indices = @transform_7, window_bounds = array<i64: 8, 128>}]} {
    %c0 = arith.constant 0 : index
    %c0_0 = arith.constant 0 : index
    %0 = vector.load %arg1[%c0, %c0_0] : memref<8x128xf32, #tpu.memory_space<vmem>>, vector<8x128xf32>
    %1 = arith.truncf %0 : vector<8x128xf32> to vector<8x128xbf16>
    %c0_1 = arith.constant 0 : index
    %c0_2 = arith.constant 0 : index
    %2 = vector.load %arg2[%c0_1, %c0_2] : memref<8x128xf32, #tpu.memory_space<vmem>>, vector<8x128xf32>
    %3 = arith.truncf %2 : vector<8x128xf32> to vector<8x128xbf16>
    %c0_3 = arith.constant 0 : index
    %c0_4 = arith.constant 0 : index
    %4 = vector.load %arg3[%c0_3, %c0_4] : memref<128x128xf32, #tpu.memory_space<vmem>>, vector<128x128xf32>
    %5 = arith.truncf %4 : vector<128x128xf32> to vector<128x128xbf16>
    %cst = arith.constant dense<0.000000e+00> : vector<8x128xf32>
    %6 = tpu.matmul %1, %5, %cst {dimension_numbers = #tpu.dot_dimension_numbers<[1], [0], [0], [1], [0, 0, 1, 1], [], []>} : vector<8x128xbf16>, vector<128x128xbf16>, vector<8x128xf32> -> vector<8x128xf32>
    %c0_5 = arith.constant 0 : index
    %c0_6 = arith.constant 0 : index
    %7 = vector.load %arg4[%c0_5, %c0_6] : memref<128x128xf32, #tpu.memory_space<vmem>>, vector<128x128xf32>
    %8 = arith.truncf %7 : vector<128x128xf32> to vector<128x128xbf16>
    %cst_7 = arith.constant dense<0.000000e+00> : vector<8x128xf32>
    %9 = tpu.matmul %3, %8, %cst_7 {dimension_numbers = #tpu.dot_dimension_numbers<[1], [0], [0], [1], [0, 0, 1, 1], [], []>} : vector<8x128xbf16>, vector<128x128xbf16>, vector<8x128xf32> -> vector<8x128xf32>
    %10 = arith.addf %6, %9 : vector<8x128xf32>
    %c0_8 = arith.constant 0 : index
    %c0_9 = arith.constant 0 : index
    %11 = vector.load %arg5[%c0_8, %c0_9] : memref<1x128xf32, #tpu.memory_space<vmem>>, vector<1x128xf32>
    %12 = vector.broadcast %11 : vector<1x128xf32> to vector<8x128xf32>
    %13 = arith.addf %10, %12 : vector<8x128xf32>
    %cst_10 = arith.constant 0.000000e+00 : f32
    %14 = vector.broadcast %cst_10 : f32 to vector<8x128xf32>
    %15 = arith.cmpf ogt, %13, %14 : vector<8x128xf32>
    %cst_11 = arith.constant 0.00999999977 : f32
    %16 = vector.broadcast %cst_11 : f32 to vector<8x128xf32>
    %17 = arith.mulf %16, %13 : vector<8x128xf32>
    %18 = arith.select %15, %13, %17 : vector<8x128xi1>, vector<8x128xf32>
    %19 = arith.truncf %18 : vector<8x128xf32> to vector<8x128xbf16>
    %c0_12 = arith.constant 0 : index
    %c0_13 = arith.constant 0 : index
    %20 = vector.load %arg6[%c0_12, %c0_13] : memref<128x128xf32, #tpu.memory_space<vmem>>, vector<128x128xf32>
    %21 = arith.truncf %20 : vector<128x128xf32> to vector<128x128xbf16>
    %cst_14 = arith.constant dense<0.000000e+00> : vector<8x128xf32>
    %22 = tpu.matmul %19, %21, %cst_14 {dimension_numbers = #tpu.dot_dimension_numbers<[1], [0], [0], [1], [0, 0, 1, 1], [], []>} : vector<8x128xbf16>, vector<128x128xbf16>, vector<8x128xf32> -> vector<8x128xf32>
    %c0_15 = arith.constant 0 : index
    %c0_16 = arith.constant 0 : index
    %23 = vector.load %arg7[%c0_15, %c0_16] : memref<1x128xf32, #tpu.memory_space<vmem>>, vector<1x128xf32>
    %24 = vector.broadcast %23 : vector<1x128xf32> to vector<8x128xf32>
    %25 = arith.addf %22, %24 : vector<8x128xf32>
    %c0_17 = arith.constant 0 : index
    %c0_18 = arith.constant 0 : index
    %26 = vector.load %arg8[%c0_17, %c0_18] : memref<8x128xf32, #tpu.memory_space<vmem>>, vector<8x128xf32>
    tpu.vector_store %arg8[%c0_17, %c0_18], %25 {strides = array<i32>} : memref<8x128xf32, #tpu.memory_space<vmem>>, vector<8x128xf32>,
    return
  }
  func.func @transform_0(%arg0: i32) -> (i32, i32) {
    %c0_i32 = arith.constant 0 : i32
    %c0_i32_0 = arith.constant 0 : i32
    return %arg0, %c0_i32 : i32, i32
  }
  func.func @transform_1(%arg0: i32) -> (i32, i32) {
    %c0_i32 = arith.constant 0 : i32
    %c0_i32_0 = arith.constant 0 : i32
    return %arg0, %c0_i32 : i32, i32
  }
  func.func @transform_2(%arg0: i32) -> (i32, i32) {
    %c0_i32 = arith.constant 0 : i32
    %c0_i32_0 = arith.constant 0 : i32
    %c0_i32_1 = arith.constant 0 : i32
    return %c0_i32, %c0_i32_0 : i32, i32
  }
  func.func @transform_3(%arg0: i32) -> (i32, i32) {
    %c0_i32 = arith.constant 0 : i32
    %c0_i32_0 = arith.constant 0 : i32
    %c0_i32_1 = arith.constant 0 : i32
    return %c0_i32, %c0_i32_0 : i32, i32
  }
  func.func @transform_4(%arg0: i32) -> (i32, i32) {
    %c0_i32 = arith.constant 0 : i32
    %c0_i32_0 = arith.constant 0 : i32
    %c0_i32_1 = arith.constant 0 : i32
    return %c0_i32, %c0_i32_0 : i32, i32
  }
  func.func @transform_5(%arg0: i32) -> (i32, i32) {
    %c0_i32 = arith.constant 0 : i32
    %c0_i32_0 = arith.constant 0 : i32
    %c0_i32_1 = arith.constant 0 : i32
    return %c0_i32, %c0_i32_0 : i32, i32
  }
  func.func @transform_6(%arg0: i32) -> (i32, i32) {
    %c0_i32 = arith.constant 0 : i32
    %c0_i32_0 = arith.constant 0 : i32
    %c0_i32_1 = arith.constant 0 : i32
    return %c0_i32, %c0_i32_0 : i32, i32
  }
  func.func @transform_7(%arg0: i32) -> (i32, i32) {
    %c0_i32 = arith.constant 0 : i32
    %c0_i32_0 = arith.constant 0 : i32
    return %arg0, %c0_i32 : i32, i32
  }
}

</mosaic_0001>

<bundles_post_ra>
// kernel: tpu_custom_call.1
= control target key start
LH: loop header
LB: loop body
LE: loop exit
PB: predicated region body
PF: predicated region fallthrough
CT: control target
= control target key end

     0   :  { %12 = vsyncpa [#allocation3], 0  ;;  %s731_s0 = inlined_call_operand.hbm [shape: f32[8,128], index: 0, kind: input, shape index: {}]   ;;  %s732_s1 = inlined_call_operand.hbm [shape: f32[8,128], index: 1, kind: input, shape index: {}]   ;;  %s733_s2 = inlined_call_operand.hbm [shape: f32[128,128], index: 2, kind: input, shape index: {}]   ;;  %s734_s3 = inlined_call_operand.hbm [shape: f32[128,128], index: 3, kind: input, shape index: {}]   ;;  %s735_s4 = inlined_call_operand.vmem [shape: f32[1,128], index: 4, kind: input, shape index: {}]   ;;  %s736_s5 = inlined_call_operand.hbm [shape: f32[128,128], index: 5, kind: input, shape index: {}]   ;;  %s737_s6 = inlined_call_operand.vmem [shape: f32[1,128], index: 6, kind: input, shape index: {}]   ;;  %s738_s7 = inlined_call_operand.hbm [shape: f32[8,128], index: 7, kind: output, shape index: {}]  }
   0x1   :  { %13 = vsyncpa [#allocation6], 0 }
   0x2   :  { %14 = vsyncpa [#allocation9], 0 }
   0x3   :  { %15 = vsyncpa [#allocation4], 0  ;;  %s564_s24 = smov [#allocation5]   ;;  %s424_s28 = scalar_lea.hbm %s732_s1, 128 }
   0x4   :  { %s32_s25 = sshll.u32 %s564_s24, 4  ;;  %p425_p0 = scmp.ne.s32.totalorder %s732_s1, %s424_s28  ;;  %s33_s25 = int_to_ptr.vmem [resolvable:$true] %s32_s25 }
   0x5   :  { %p428_p1 = scmp.lt.u32.totalorder %s424_s28, %s732_s1 }
   0x7   :  { %p430_p2 = pnand %p428_p1, %p425_p0 }
   0x9   :  { %433 = shalt.err (!%p430_p2)
}
   0xa   :  { %s434_s10 = scalar_lea.vmem %s33_s25, 128  ;;  %p439_p4 = scmp.lt.s32.totalorder %s33_s25, %s33_s25 }
   0xb   :  { %p435_p3 = scmp.ne.s32.totalorder %s33_s25, %s434_s10  ;;  %p440_p5 = scmp.lt.s32.totalorder %s434_s10, %s434_s10 }
   0xd   :  { %p441_p6 = por %p440_p5, %p439_p4 }
   0xf   :  { %p442_p7 = pnand %p441_p6, %p435_p3 }
  0x11   :  { %445 = shalt.err (!%p442_p7)
}
  0x12   :  { %35 = dma.hbm_to_vmem [thread:$0]  %s732_s1, 128, %s33_s25, [#allocation6]  }
  0x13   :  { %s565_s13 = smov [#allocation8]   ;;  %s566_s15 = smov [#allocation2]  }
  0x14   :  { %s53_s14 = sshll.u32 %s565_s13, 4  ;;  %s22_s16 = sshll.u32 %s566_s15, 4  ;;  %s54_s14 = int_to_ptr.vmem [resolvable:$true] %s53_s14  ;;  %s23_s16 = int_to_ptr.vmem [resolvable:$true] %s22_s16 }
  0x15   :  { %s446_s19 = scalar_lea.hbm %s734_s3, 2048 }
  0x16   :  { %p447_p8 = scmp.ne.s32.totalorder %s734_s3, %s446_s19  ;;  %p450_p9 = scmp.lt.u32.totalorder %s446_s19, %s734_s3 }
  0x18   :  { %p452_p10 = pnand %p450_p9, %p447_p8 }
  0x1a   :  { %455 = shalt.err (!%p452_p10)
}
  0x1b   :  { %s456_s1 = scalar_lea.vmem %s54_s14, 2048  ;;  %p461_p12 = scmp.lt.s32.totalorder %s54_s14, %s54_s14 }
  0x1c   :  { %p457_p11 = scmp.ne.s32.totalorder %s54_s14, %s456_s1  ;;  %p462_p13 = scmp.lt.s32.totalorder %s456_s1, %s456_s1 }
  0x1e   :  { %p463_p0 = por %p462_p13, %p461_p12 }
  0x20   :  { %p464_p1 = pnand %p463_p0, %p457_p11 }
  0x22   :  { %467 = shalt.err (!%p464_p1)
}
  0x23   :  { %s567_s24 = smov 128   ;;  %s568_s25 = smov 8  }
  0x24   :  { %59 = dma.hbm_to_vmem [thread:$0]  %s734_s3, 2048, %s54_s14, [#allocation9], %s567_s24, %s567_s24, %s568_s25  }
  0x25   :  { %s468_s30 = scalar_lea.hbm %s731_s0, 128 }
  0x26   :  { %p469_p2 = scmp.ne.s32.totalorder %s731_s0, %s468_s30  ;;  %p472_p3 = scmp.lt.u32.totalorder %s468_s30, %s731_s0 }
  0x28   :  { %p474_p4 = pnand %p472_p3, %p469_p2 }
  0x2a   :  { %477 = shalt.err (!%p474_p4)
}
  0x2b   :  { %s478_s12 = scalar_lea.vmem %s23_s16, 128  ;;  %p483_p6 = scmp.lt.s32.totalorder %s23_s16, %s23_s16 }
  0x2c   :  { %p479_p5 = scmp.ne.s32.totalorder %s23_s16, %s478_s12  ;;  %p484_p7 = scmp.lt.s32.totalorder %s478_s12, %s478_s12 }
  0x2e   :  { %p485_p8 = por %p484_p7, %p483_p6 }
  0x30   :  { %p486_p9 = pnand %p485_p8, %p479_p5 }
  0x32   :  { %489 = shalt.err (!%p486_p9)
}
  0x33   :  { %25 = dma.hbm_to_vmem [thread:$0]  %s731_s0, 128, %s23_s16, [#allocation3]  }
  0x34   :  { %s569_s14 = smov [#allocation7]   ;;  %s570_s17 = smov [#allocation10]  }
  0x35   :  { %s41_s15 = sshll.u32 %s569_s14, 4  ;;  %s67_s18 = sshll.u32 %s570_s17, 4  ;;  %s42_s15 = int_to_ptr.vmem [resolvable:$true] %s41_s15  ;;  %s68_s18 = int_to_ptr.vmem [resolvable:$true] %s67_s18 }
  0x36   :  { %s490_s21 = scalar_lea.hbm %s733_s2, 2048 }
  0x37   :  { %p491_p10 = scmp.ne.s32.totalorder %s733_s2, %s490_s21  ;;  %p494_p11 = scmp.lt.u32.totalorder %s490_s21, %s733_s2 }
  0x39   :  { %p496_p12 = pnand %p494_p11, %p491_p10 }
  0x3b   :  { %499 = shalt.err (!%p496_p12)
}
  0x3c   :  { %s500_s0 = scalar_lea.vmem %s42_s15, 2048  ;;  %p505_p0 = scmp.lt.s32.totalorder %s42_s15, %s42_s15 }
  0x3d   :  { %p501_p13 = scmp.ne.s32.totalorder %s42_s15, %s500_s0  ;;  %p506_p1 = scmp.lt.s32.totalorder %s500_s0, %s500_s0 }
  0x3f   :  { %p507_p2 = por %p506_p1, %p505_p0 }
  0x41   :  { %p508_p3 = pnand %p507_p2, %p501_p13 }
  0x43   :  { %511 = shalt.err (!%p508_p3)
}
  0x44   :  { %47 = dma.hbm_to_vmem [thread:$0]  %s733_s2, 2048, %s42_s15, [#allocation6], %s567_s24, %s567_s24, %s568_s25  }
  0x45   :  { %s512_s30 = scalar_lea.hbm %s736_s5, 2048 }
  0x46   :  { %p513_p4 = scmp.ne.s32.totalorder %s736_s5, %s512_s30  ;;  %p516_p5 = scmp.lt.u32.totalorder %s512_s30, %s736_s5 }
  0x48   :  { %p518_p6 = pnand %p516_p5, %p513_p4 }
  0x4a   :  { %521 = shalt.err (!%p518_p6)
}
  0x4b   :  { %s522_s12 = scalar_lea.vmem %s68_s18, 2048  ;;  %p527_p8 = scmp.lt.s32.totalorder %s68_s18, %s68_s18 }
  0x4c   :  { %p523_p7 = scmp.ne.s32.totalorder %s68_s18, %s522_s12  ;;  %p528_p9 = scmp.lt.s32.totalorder %s522_s12, %s522_s12 }
  0x4e   :  { %p529_p10 = por %p528_p9, %p527_p8 }
  0x50   :  { %p530_p11 = pnand %p529_p10, %p523_p7 }
  0x52   :  { %533 = shalt.err (!%p530_p11)
}
  0x53   :  { %73 = dma.hbm_to_vmem [thread:$0]  %s736_s5, 2048, %s68_s18, [#allocation9], %s567_s24, %s567_s24, %s568_s25  }
  0x54   :  { %556 = dma.done.wait [#allocation3], 128  }
  0x55   :  { %557 = vsyncadd [#allocation3], 4294967168 }
  0x56   :  { %558 = dma.done.wait [#allocation6], 2176  }
  0x57   :  { %559 = vsyncadd [#allocation6], 4294965120 }
  0x58   :  { %560 = dma.done.wait [#allocation9], 4096  }
  0x59   :  { %561 = vsyncadd [#allocation9], 4294963200  ;;  %v571_v0 = vmov 0.0   ;;  %vm572_vm0 = vmmov 0   ;;  %v120_v1 = vld [vmem:[#allocation8] sm:$0xff]  ;;  %v121_v2 = vld [vmem:[#allocation8 + $0x8] sm:$0xff] }
  0x5a   :  { %354 = vmatprep.subr.bf16.mxu0 %v571_v0  ;;  %374 = vmatprep.subr.bf16.mxu1 %v571_v0  ;;  %v96_v3 = vld [vmem:[#allocation7] sm:$0xff]  ;;  %v136_v4 = vpack.c.bf16 %v121_v2, %v120_v1  ;;  %v97_v5 = vld [vmem:[#allocation7 + $0x8] sm:$0xff]  ;;  %v122_v6 = vld [vmem:[#allocation8 + $0x10] sm:$0xff]  ;;  %s573_s14 = smov [#allocation11]  }
  0x5b   :  { %370 = vmatprep.mubr.msk.bf16.mxu0 %vm572_vm0, %v571_v0  ;;  %390 = vmatprep.mubr.msk.bf16.mxu1 %vm572_vm0, %v571_v0  ;;  %v123_v7 = vld [vmem:[#allocation8 + $0x18] sm:$0xff]  ;;  %v112_v8 = vpack.c.bf16 %v97_v5, %v96_v3  ;;  %v98_v9 = vld [vmem:[#allocation7 + $0x10] sm:$0xff]  ;;  %v124_v13 = vld [vmem:[#allocation8 + $0x20] sm:$0xff]  ;;  %s314_s15 = sshll.u32 %s573_s14, 4  ;;  %s315_s15 = int_to_ptr.vmem [resolvable:$true] %s314_s15 }
  0x5c   :  { %v99_v10 = vld [vmem:[#allocation7 + $0x18] sm:$0xff]  ;;  %355 = vmatpush3.bf16.msra.mxu0 %v136_v4  ;;  %v137_v11 = vpack.c.bf16 %v123_v7, %v122_v6  ;;  %v125_v14 = vld [vmem:[#allocation8 + $0x28] sm:$0xff]  ;;  %v100_v15 = vld [vmem:[#allocation7 + $0x20] sm:$0xff]  ;;  %p539_p13 = scmp.lt.s32.totalorder %s315_s15, %s315_s15 }
  0x5d   :  { %375 = vmatpush3.bf16.msra.mxu1 %v112_v8  ;;  %356 = vmatprep.subr.bf16.mxu0 %v571_v0  ;;  %v113_v12 = vpack.c.bf16 %v99_v10, %v98_v9  ;;  %v101_v16 = vld [vmem:[#allocation7 + $0x28] sm:$0xff]  ;;  %v138_v17 = vpack.c.bf16 %v125_v14, %v124_v13  ;;  %v126_v19 = vld [vmem:[#allocation8 + $0x30] sm:$0xff]  ;;  %v127_v20 = vld [vmem:[#allocation8 + $0x38] sm:$0xff] }
  0x5e   :  { %376 = vmatprep.subr.bf16.mxu1 %v571_v0  ;;  %v114_v18 = vpack.c.bf16 %v101_v16, %v100_v15  ;;  %v102_v21 = vld [vmem:[#allocation7 + $0x30] sm:$0xff]  ;;  %v103_v22 = vld [vmem:[#allocation7 + $0x38] sm:$0xff]  ;;  %v139_v23 = vpack.c.bf16 %v127_v20, %v126_v19  ;;  %v128_v25 = vld [vmem:[#allocation8 + $0x40] sm:$0xff] }
  0x5f   :  { %v115_v24 = vpack.c.bf16 %v103_v22, %v102_v21  ;;  %v129_v26 = vld [vmem:[#allocation8 + $0x48] sm:$0xff]  ;;  %v104_v27 = vld [vmem:[#allocation7 + $0x40] sm:$0xff]  ;;  %v130_v31 = vld [vmem:[#allocation8 + $0x50] sm:$0xff] }
  0x60   :  { %357 = vmatpush3.bf16.msra.mxu0 %v137_v11  ;;  %v105_v28 = vld [vmem:[#allocation7 + $0x48] sm:$0xff]  ;;  %v140_v29 = vpack.c.bf16 %v129_v26, %v128_v25  ;;  %v131_v32 = vld [vmem:[#allocation8 + $0x58] sm:$0xff]  ;;  %v106_v33 = vld [vmem:[#allocation7 + $0x50] sm:$0xff] }
  0x61   :  { %377 = vmatpush3.bf16.msra.mxu1 %v113_v12  ;;  %358 = vmatprep.subr.bf16.mxu0 %v571_v0  ;;  %v116_v30 = vpack.c.bf16 %v105_v28, %v104_v27  ;;  %v107_v34 = vld [vmem:[#allocation7 + $0x58] sm:$0xff]  ;;  %v141_v35 = vpack.c.bf16 %v131_v32, %v130_v31  ;;  %v132_v37 = vld [vmem:[#allocation8 + $0x60] sm:$0xff]  ;;  %v133_v38 = vld [vmem:[#allocation8 + $0x68] sm:$0xff] }
  0x62   :  { %378 = vmatprep.subr.bf16.mxu1 %v571_v0  ;;  %v117_v36 = vpack.c.bf16 %v107_v34, %v106_v33  ;;  %v108_v39 = vld [vmem:[#allocation7 + $0x60] sm:$0xff]  ;;  %v109_v40 = vld [vmem:[#allocation7 + $0x68] sm:$0xff]  ;;  %v142_v41 = vpack.c.bf16 %v133_v38, %v132_v37  ;;  %v134_v43 = vld [vmem:[#allocation8 + $0x70] sm:$0xff] }
  0x63   :  { %v118_v42 = vpack.c.bf16 %v109_v40, %v108_v39  ;;  %v135_v44 = vld [vmem:[#allocation8 + $0x78] sm:$0xff]  ;;  %v110_v45 = vld [vmem:[#allocation7 + $0x70] sm:$0xff]  ;;  %v236_v51 = vld [vmem:[#allocation10] sm:$0xff] }
  0x64   :  { %359 = vmatpush3.bf16.msra.mxu0 %v138_v17  ;;  %v111_v46 = vld [vmem:[#allocation7 + $0x78] sm:$0xff]  ;;  %v143_v47 = vpack.c.bf16 %v135_v44, %v134_v43  ;;  %v92_v50 = vld [vmem:[#allocation2] sm:$0xff]  ;;  %v237_v52 = vld [vmem:[#allocation10 + $0x8] sm:$0xff] }
  0x65   :  { %379 = vmatpush3.bf16.msra.mxu1 %v114_v18  ;;  %360 = vmatprep.subr.bf16.mxu0 %v571_v0  ;;  %v94_v48 = vld [vmem:[#allocation5] sm:$0xff]  ;;  %v119_v49 = vpack.c.bf16 %v111_v46, %v110_v45  ;;  %v93_v54 = vpack.c.bf16 %v92_v50, %v92_v50  ;;  %v252_v55 = vpack.c.bf16 %v237_v52, %v236_v51  ;;  %v238_v56 = vld [vmem:[#allocation10 + $0x10] sm:$0xff]  ;;  %v240_v59 = vld [vmem:[#allocation10 + $0x20] sm:$0xff] }
  0x66   :  { %380 = vmatprep.subr.bf16.mxu1 %v571_v0  ;;  %v95_v53 = vpack.c.bf16 %v94_v48, %v94_v48  ;;  %v239_v57 = vld [vmem:[#allocation10 + $0x18] sm:$0xff]  ;;  %v241_v60 = vld [vmem:[#allocation10 + $0x28] sm:$0xff]  ;;  %v242_v62 = vld [vmem:[#allocation10 + $0x30] sm:$0xff] }
  0x67   :  { %v253_v58 = vpack.c.bf16 %v239_v57, %v238_v56  ;;  %v254_v61 = vpack.c.bf16 %v241_v60, %v240_v59  ;;  %v243_v63 = vld [vmem:[#allocation10 + $0x38] sm:$0xff]  ;;  %v244_v2 = vld [vmem:[#allocation10 + $0x40] sm:$0xff]  ;;  %v245_v3 = vld [vmem:[#allocation10 + $0x48] sm:$0xff] }
  0x68   :  { %361 = vmatpush3.bf16.msra.mxu0 %v139_v23  ;;  %v255_v1 = vpack.c.bf16 %v243_v63, %v242_v62  ;;  %v256_v4 = vpack.c.bf16 %v245_v3, %v244_v2  ;;  %v246_v5 = vld [vmem:[#allocation10 + $0x50] sm:$0xff]  ;;  %v247_v6 = vld [vmem:[#allocation10 + $0x58] sm:$0xff]  ;;  %v248_v8 = vld [vmem:[#allocation10 + $0x60] sm:$0xff] }
  0x69   :  { %381 = vmatpush3.bf16.msra.mxu1 %v115_v24  ;;  %362 = vmatprep.subr.bf16.mxu0 %v571_v0  ;;  %v257_v7 = vpack.c.bf16 %v247_v6, %v246_v5  ;;  %v249_v9 = vld [vmem:[#allocation10 + $0x68] sm:$0xff]  ;;  %v250_v11 = vld [vmem:[#allocation10 + $0x70] sm:$0xff]  ;;  %v251_v12 = vld [vmem:[#allocation10 + $0x78] sm:$0xff] }
  0x6a   :  { %382 = vmatprep.subr.bf16.mxu1 %v571_v0  ;;  %v258_v10 = vpack.c.bf16 %v249_v9, %v248_v8  ;;  %v259_v13 = vpack.c.bf16 %v251_v12, %v250_v11  ;;  %v325_v16 = vld [vmem:[%s735_s4] ss:$0 sm:$0xff]  ;;  %s534_s4 = scalar_lea.vmem %s315_s15, 128 }
  0x6b   :  { %v326_v27 = vld [vmem:[%s737_s6] ss:$0 sm:$0xff]  ;;  %p535_p12 = scmp.ne.s32.totalorder %s315_s15, %s534_s4  ;;  %p540_p0 = scmp.lt.s32.totalorder %s534_s4, %s534_s4 }
  0x6c   :  { %363 = vmatpush3.bf16.msra.mxu0 %v140_v29 }
  0x6d   :  { %383 = vmatpush3.bf16.msra.mxu1 %v116_v30  ;;  %364 = vmatprep.subr.bf16.mxu0 %v571_v0  ;;  %p541_p1 = por %p540_p0, %p539_p13 }
  0x6e   :  { %384 = vmatprep.subr.bf16.mxu1 %v571_v0 }
  0x6f   :  { %p542_p2 = pnand %p541_p1, %p535_p12 }
  0x70   :  { %365 = vmatpush3.bf16.msra.mxu0 %v141_v35 }
  0x71   :  { %385 = vmatpush3.bf16.msra.mxu1 %v117_v36  ;;  %366 = vmatprep.subr.bf16.mxu0 %v571_v0 }
  0x72   :  { %386 = vmatprep.subr.bf16.mxu1 %v571_v0 }
  0x74   :  { %367 = vmatpush3.bf16.msra.mxu0 %v142_v41 }
  0x75   :  { %387 = vmatpush3.bf16.msra.mxu1 %v118_v42  ;;  %368 = vmatprep.subr.bf16.mxu0 %v571_v0 }
  0x76   :  { %388 = vmatprep.subr.bf16.mxu1 %v571_v0 }
  0x78   :  { %369 = vmatpush3.bf16.msra.mxu0 %v143_v47 }
  0x79   :  { %389 = vmatpush3.bf16.msra.mxu1 %v119_v49  ;;  %394 = vmatprep.subr.bf16.mxu0 %v571_v0 }
  0x7b   :  { %371 = vmatmul.mubr.bf16.vlgmr.msra.gmra.mrb[0].mxu0 %v95_v53 }
  0x7c   :  { %391 = vmatmul.mubr.bf16.vlgmr.msra.gmra.mrb[0].mxu1 %v93_v54  ;;  %395 = vmatpush3.bf16.msra.mxu0 %v252_v55 }
  0x7d   :  { %396 = vmatprep.subr.bf16.mxu0 %v571_v0  ;;  %410 = vmatprep.mubr.msk.bf16.mxu0 %vm572_vm0, %v571_v0 }
  0x80   :  { %397 = vmatpush3.bf16.msra.mxu0 %v253_v58 }
  0x81   :  { %398 = vmatprep.subr.bf16.mxu0 %v571_v0 }
  0x84   :  { %399 = vmatpush3.bf16.msra.mxu0 %v254_v61 }
  0x85   :  { %400 = vmatprep.subr.bf16.mxu0 %v571_v0 }
  0x88   :  { %401 = vmatpush3.bf16.msra.mxu0 %v255_v1 }
  0x89   :  { %402 = vmatprep.subr.bf16.mxu0 %v571_v0 }
  0x8c   :  { %403 = vmatpush3.bf16.msra.mxu0 %v256_v4 }
  0x8d   :  { %404 = vmatprep.subr.bf16.mxu0 %v571_v0 }
  0x90   :  { %405 = vmatpush3.bf16.msra.mxu0 %v257_v7 }
  0x91   :  { %406 = vmatprep.subr.bf16.mxu0 %v571_v0 }
  0x94   :  { %407 = vmatpush3.bf16.msra.mxu0 %v258_v10 }
  0x95   :  { %408 = vmatprep.subr.bf16.mxu0 %v571_v0 }
  0x98   :  { %409 = vmatpush3.bf16.msra.mxu0 %v259_v13 }
 0x14e   :  { %v178_v14 = vpop.f32.mrb[0].mxu0 }
 0x14f   :  { %v218_v15 = vpop.f32.mrb[0].mxu1  ;;  %v372_v17 = vpop.f32.mrb[1].mxu0 }
 0x150   :  { %v219_v18 = vadd.f32 %v218_v15, %v178_v14  ;;  %v392_v19 = vpop.f32.mrb[1].mxu1  ;;  %v181_v20 = vpop.f32.mrb[2].mxu0 }
 0x151   :  { %v221_v21 = vpop.f32.mrb[2].mxu1  ;;  %v373_v22 = vpop.f32.mrb[3].mxu0 }
 0x152   :  { %v231_v23 = vadd.f32 %v325_v16, %v219_v18  ;;  %v393_v24 = vpop.f32.mrb[3].mxu1 }
 0x154   :  { %vm232_vm1 = vcmp.gt.f32.partialorder %v231_v23, 0.0  ;;  %v233_v0 = vmul.f32 0.01, %v231_v23 }
 0x156   :  { %v234_v25 = vsel %vm232_vm1, %v231_v23, %v233_v0 }
 0x157   :  { %v235_v26 = vpack.c.bf16 %v234_v25, %v234_v25 }
 0x159   :  { %411 = vmatmul.mubr.bf16.vlgmr.msra.gmra.mrb[4].mxu0 %v235_v26 }
 0x22c   :  { %v301_v28 = vpop.f32.mrb[4].mxu0 }
 0x22d   :  { %v302_v29 = vadd.f32 %v326_v27, %v301_v28  ;;  %v412_v30 = vpop.f32.mrb[5].mxu0 }
 0x22e   :  { %v304_v31 = vpop.f32.mrb[6].mxu0 }
 0x22f   :  { %307 = vst [vmem:[#allocation11] sm:$0xff] %v302_v29  ;;  %v413_v32 = vpop.f32.mrb[7].mxu0 }
 0x230   :  { %545 = shalt.err (!%p542_p2)
}
 0x231   :  { %s546_s6 = scalar_lea.hbm %s738_s7, 128 }
 0x232   :  { %p547_p3 = scmp.ne.s32.totalorder %s738_s7, %s546_s6  ;;  %p550_p4 = scmp.lt.u32.totalorder %s546_s6, %s738_s7 }
 0x234   :  { %p552_p5 = pnand %p550_p4, %p547_p3 }
 0x236   :  { %555 = shalt.err (!%p552_p5)
}
 0x237   :  { %317 = dma.vmem_to_hbm [thread:$0]  %s315_s15, 128, %s738_s7, [#allocation4]  }
 0x238   :  { %562 = dma.done.wait [#allocation4], 128  }
 0x239   :  { %563 = vsyncadd [#allocation4], 4294967168 }
 0x23a   :  { %321 = vsyncpa [#allocation3], 1 }
 0x23b   :  { %322 = vsyncpa [#allocation6], 1 }
 0x23c   :  { %323 = vsyncpa [#allocation9], 1 }
 0x23d   :  { %324 = vsyncpa [#allocation4], 1 }

</bundles_post_ra>
